<compile_context>
chip_gen: v6e
topology: v6e:2x2x1
jax: 0.10.0
libtpu: 0.0.40
codegen_flags: <defaults>
</compile_context>

<pallas_src>
import itertools
import numpy as np

import jax
import jax.numpy as jnp
from jax.experimental import pallas as pl
from jax.experimental.pallas import tpu as pltpu

# ----------------------------- configuration --------------------------------
NUM_CLASSES = 4
NUM_OBJECTS = 8                 # N: number of prediction slots / target slots
MASK_DIM    = 128               # C (== lane width, assumed by the kernel)
CLASS_DIM   = NUM_CLASSES + 1   # P (includes null class column in class_probs)
REG_DIM     = 4                 # R
BATCH       = 2
LANES       = 128

LOSS_WEIGHTS = {
    "object_class_ce": 1.0,
    "mask_dice": 1.0,
    "mask_ce": 1.0,
    "mask_focal": 1.0,
    "regression": 1.0,
}
FOCAL_GAMMA = 2.0  # alpha = -1 (disabled), matching torch defaults


# ------------------------------ Pallas kernel --------------------------------
def _cost_kernel(bn_ref,      # SMEM (B,) int32   -- scalar prefetch (valid count per batch)
                 pred_ref,    # (2N + R*N, 128)   pred slab (this batch)
                 rhs_ref,     # (2C, 128)         RHS slab  (this batch)
                 out_ref):    # (N, 128)          lane-dense cost block (this batch)
    f32 = jnp.float32
    N, lanes = out_ref.shape
    C = lanes
    R = (pred_ref.shape[0] - 2 * N) // N
    b = pl.program_id(0)

    w_dice  = LOSS_WEIGHTS["mask_dice"]
    w_ce    = LOSS_WEIGHTS["mask_ce"]
    w_focal = LOSS_WEIGHTS["mask_focal"]
    w_reg   = LOSS_WEIGHTS["regression"]
    inv_C = 1.0 / C
    inv_R = 1.0 / R

    x     = pred_ref[0:N, :]          # (N, C)   mask logits
    probs = pred_ref[N:2 * N, :]      # (N, 128) class probs in lanes [0, P); zeros elsewhere

    # ---- numerically stable BCE-with-logits pieces (EUP: exp, log1p, sigmoid) ----
    e   = jnp.exp(-jnp.abs(x))
    pos = jnp.maximum(-x, 0.0) + jnp.log1p(e)     # softplus(-x) == BCE(x, 1)   (stable)
    neg = x + pos                                 # softplus(x)  == BCE(x, 0)
    sig = jax.nn.sigmoid(x)
    om  = 1.0 - sig
    fpos = om * om * pos                          # gamma == 2 -> explicit squares (VALU)
    fneg = sig * sig * neg

    # ce + focal share one matmul LHS:  pos - neg == -x  exactly.
    comb     = (w_focal * (fpos - fneg) - w_ce * x) * inv_C                    # (N, C)
    comb_off = jnp.sum((w_ce * neg + w_focal * fneg) * inv_C, axis=-1, keepdims=True)  # (N,1)
    sig_sum  = jnp.sum(sig, axis=-1, keepdims=True)                            # (N, 1)

    mtT      = rhs_ref[0:C, :]            # (C, 128)   mask targets, lane m = target slot m
    aux_rhs  = rhs_ref[C:2 * C, :]        # (128, 128) class one-hot rows (+ zero-laned extras)
    tgt_sum  = rhs_ref[C + 8:C + 9, :]    # (1, 128)   per-target mask sums (precomputed)

    # ---- three small MXU dots against the resident, lane-aligned RHS slab ----
    sig_t    = jnp.dot(sig,   mtT,     preferred_element_type=f32)   # dice numerator
    comb_t   = jnp.dot(comb,  mtT,     preferred_element_type=f32)   # ce + focal matmul part
    cls_cost = jnp.dot(probs, aux_rhs, preferred_element_type=f32)   # already -w_cls scaled

    dice = 1.0 - (2.0 * sig_t + 1.0) / (sig_sum + tgt_sum + 1.0)

    # ---- regression MAE: pre-broadcast planes -> pure vreg loads + VPU abs/add ----
    mae = jnp.abs(pred_ref[2 * N:3 * N, :] - rhs_ref[C + 16:C + 16 + N, :])
    for r in range(1, R):
        p0 = 2 * N + r * N
        t0 = C + 16 + r * N
        mae = mae + jnp.abs(pred_ref[p0:p0 + N, :] - rhs_ref[t0:t0 + N, :])

    cost = cls_cost + w_dice * dice + comb_t + comb_off + (w_reg * inv_R) * mae

    # ---- pad-region NaN mask + single lane-dense store ----
    col = jax.lax.broadcasted_iota(jnp.int32, (N, lanes), 1)
    out_ref[...] = jnp.where(col < bn_ref[b], cost, jnp.nan)


@jax.jit
def get_batch_cost_pallas(class_probs, object_class, mask_pred, mask_tgt,
                          reg_pred, reg_tgt):
    """Returns (cost (B,N,N) float32 with NaN in pad cols, batch_n (B,) int32)."""
    f32 = jnp.float32
    B, N, P = class_probs.shape
    C = mask_pred.shape[-1]
    R = reg_pred.shape[-1]
    w_cls = LOSS_WEIGHTS["object_class_ce"]

    assert C == LANES, "kernel assumes the mask dim equals the 128-lane width"
    assert P <= 8 and 16 + R * N <= C, "RHS slab layout assumptions violated"

    valid = object_class != NUM_CLASSES                                    # (B, N)
    batch_n = jnp.sum(valid, axis=1).astype(jnp.int32)                     # (B,)

    # -------- pred slab (B, 2N + R*N, 128) --------
    # rows [0, N)      : mask logits
    # rows [N, 2N)     : class probs (lanes [0, P), zeros elsewhere)
    # rows [2N, 2N+RN) : reg_pred lane-broadcast planes (plane r = rows 2N+rN .. 2N+(r+1)N)
    mask_rows  = mask_pred.astype(f32)
    probs_rows = jnp.zeros((B, N, LANES), f32).at[:, :, :P].set(class_probs.astype(f32))
    reg_planes = jnp.broadcast_to(
        jnp.transpose(reg_pred.astype(f32), (0, 2, 1))[..., None],         # (B, R, N, 1)
        (B, R, N, LANES)).reshape(B, R * N, LANES)
    pred_slab = jnp.concatenate([mask_rows, probs_rows, reg_planes], axis=1)

    # -------- RHS slab (B, 2C, 128) --------
    # rows [0, C)           : mask_tgt^T (row c, lane m = mask_tgt[b, m, c]; lanes >= N zero)
    # rows [C, C+NUMC)      : -w_cls * one-hot(class) rows  (class-dot RHS for probs lanes)
    # row  C+8              : per-target mask sums           (multiplies zero probs lane 8)
    # rows [C+16, C+16+RN)  : masked reg-target planes, plane r replicated over N sublanes
    mtT = jnp.zeros((B, C, LANES), f32).at[:, :, :N].set(
        jnp.transpose(mask_tgt.astype(f32), (0, 2, 1)))
    onehot = (object_class[:, None, :] == jnp.arange(NUM_CLASSES)[None, :, None])
    onehot = onehot & (jnp.arange(N)[None, None, :] < NUM_CLASSES)          # spec: first NC cols only
    cls_rows = jnp.zeros((B, 8, LANES), f32).at[:, :NUM_CLASSES, :N].set(
        (-w_cls) * onehot.astype(f32))
    tsum_rows = jnp.zeros((B, 8, LANES), f32).at[:, 0, :N].set(
        jnp.sum(mask_tgt.astype(f32), axis=-1))
    rt_masked = reg_tgt.astype(f32) * valid[:, :, None].astype(f32)         # (B, N, R)
    rt_planes = jnp.zeros((B, R * N, LANES), f32).at[:, :, :N].set(
        jnp.broadcast_to(jnp.transpose(rt_masked, (0, 2, 1))[:, :, None, :],
                         (B, R, N, N)).reshape(B, R * N, N))
    tail_rows = 2 * C - (C + 16 + R * N)
    parts = [mtT, cls_rows, tsum_rows, rt_planes]
    if tail_rows > 0:
        parts.append(jnp.zeros((B, tail_rows, LANES), f32))
    rhs_slab = jnp.concatenate(parts, axis=1)                               # (B, 2C, 128)

    grid_spec = pltpu.PrefetchScalarGridSpec(
        num_scalar_prefetch=1,
        grid=(B,),
        in_specs=[
            pl.BlockSpec((None, 2 * N + R * N, LANES), lambda b, bn: (b, 0, 0)),
            pl.BlockSpec((None, 2 * C, LANES),         lambda b, bn: (b, 0, 0)),
        ],
        out_specs=pl.BlockSpec((None, N, LANES), lambda b, bn: (b, 0, 0)),
    )

    flops = B * (3 * 2 * N * C * LANES + 50 * N * LANES)
    transcendentals = B * 4 * N * C
    bytes_accessed = B * ((2 * N + R * N) + 2 * C + N) * LANES * 4 + B * 4

    cost_wide = pl.pallas_call(
        _cost_kernel,
        out_shape=jax.ShapeDtypeStruct((B, N, LANES), jnp.float32),
        grid_spec=grid_spec,
        compiler_params=pltpu.CompilerParams(dimension_semantics=("parallel",)),
        cost_estimate=pl.CostEstimate(flops=flops, transcendentals=transcendentals,
                                      bytes_accessed=bytes_accessed),
    )(batch_n, pred_slab, rhs_slab)

    return cost_wide[:, :, :N], batch_n


# -------------------- host-side LAP (no Pallas equivalent) -------------------
# TODO(synk): linear_sum_assignment is a sequential combinatorial solver; it runs on
# the host (O(n^3) Jonker-Volgenant), mirroring the reference .cpu().numpy() loop.
# In a training loop this host solve should be overlapped with the next step's
# async device dispatch rather than serialized behind block_until_ready.
def _linear_sum_assignment(cost):
    """O(n^3) LAP. Returns (row_ind, col_ind) in scipy format (rows sorted)."""
    cost = np.asarray(cost, dtype=np.float64)
    if cost.size == 0:
        return np.empty(0, np.int64), np.empty(0, np.int64)
    transposed = False
    if cost.shape[0] < cost.shape[1]:
        cost = cost.T
        transposed = True
    C = cost.T                               # (n_cols, n_rows), n_cols <= n_rows
    n, m = C.shape
    u = np.zeros(n)
    v = np.zeros(m + 1)
    p = np.full(m + 1, -1, dtype=np.int64)
    way = np.zeros(m + 1, dtype=np.int64)
    for i in range(n):
        p[m] = i
        j0 = m
        minv = np.full(m + 1, np.inf)
        used = np.zeros(m + 1, dtype=bool)
        while True:
            used[j0] = True
            i0 = p[j0]
            delta = np.inf
            j1 = -1
            for j in range(m):
                if not used[j]:
                    cur = C[i0, j] - u[i0] - v[j]
                    if cur < minv[j]:
                        minv[j] = cur
                        way[j] = j0
                    if minv[j] < delta:
                        delta = minv[j]
                        j1 = j
            for j in range(m + 1):
                if used[j]:
                    u[p[j]] += delta
                    v[j] -= delta
                else:
                    minv[j] -= delta
            j0 = j1
            if p[j0] == -1:
                break
        while True:
            j1 = way[j0]
            p[j0] = p[j1]
            j0 = j1
            if j0 == m:
                break
    rows, cols = [], []
    for j in range(m):
        if p[j] >= 0:
            rows.append(j)
            cols.append(int(p[j]))
    row_ind = np.asarray(rows, dtype=np.int64)
    col_ind = np.asarray(cols, dtype=np.int64)
    if transposed:
        row_ind, col_ind = col_ind, row_ind
        order = np.argsort(row_ind)
        row_ind, col_ind = row_ind[order], col_ind[order]
    return row_ind, col_ind


def _bruteforce_min_cost(cost):
    """Test-only optimality check (tiny matrices)."""
    n_rows, n_cols = cost.shape
    best = None
    for perm in itertools.permutations(range(n_rows), n_cols):
        c = float(sum(cost[perm[j], j] for j in range(n_cols)))
        if best is None or c < best:
            best = c
    return best


def hungarian_matcher_forward(preds, targets):
    """Replicates HungarianMatcher.forward (lap_scipy path) semantics."""
    cost, batch_n = get_batch_cost_pallas(
        preds["class_probs"], targets["object_class"],
        preds["masks"], targets["masks"],
        preds["regression"], targets["regression"])
    cost = jax.block_until_ready(cost)
    cost_np = np.asarray(jax.device_get(cost)).astype(np.float32)
    bn_np = np.asarray(jax.device_get(batch_n))

    B = cost_np.shape[0]
    default_idx = set(range(NUM_OBJECTS))
    idxs = []
    for b in range(B):
        c = cost_np[b][:, : int(bn_np[b])]
        src_idx, tgt_idx = _linear_sum_assignment(c)
        idx = src_idx[tgt_idx]
        idx = [int(i) for i in idx] + sorted(default_idx - set(int(i) for i in idx))
        idxs.append(np.asarray(idx, dtype=np.int64))
    idxs = np.stack(idxs)
    return (np.arange(B)[:, None], idxs), cost_np, bn_np


# ----------------------------- pure-JAX reference ----------------------------
def _ref_cost(class_probs, object_class, mask_pred, mask_tgt, reg_pred, reg_tgt):
    B, N, _ = class_probs.shape
    C = mask_pred.shape[-1]
    valid_obj = object_class != NUM_CLASSES
    oct_ = jnp.broadcast_to(object_class[:, :NUM_CLASSES][:, None, :], (B, N, NUM_CLASSES))
    vm = (oct_ != NUM_CLASSES)
    gathered = jnp.take_along_axis(class_probs, oct_ * vm.astype(oct_.dtype), axis=2) * vm
    class_cost = jnp.zeros((B, N, N)).at[:, :, :NUM_CLASSES].set(-gathered)
    cost = LOSS_WEIGHTS["object_class_ce"] * class_cost

    sig = jax.nn.sigmoid(mask_pred)
    numer = 2 * jnp.einsum("bnc,bmc->bnm", sig, mask_tgt)
    denom = sig.sum(-1)[:, :, None] + mask_tgt.sum(-1)[:, None, :]
    cost += LOSS_WEIGHTS["mask_dice"] * (1 - (numer + 1) / (denom + 1))

    pos = jax.nn.softplus(-mask_pred)
    neg = mask_pred + pos
    cost += LOSS_WEIGHTS["mask_ce"] * (
        jnp.einsum("bnc,bmc->bnm", pos, mask_tgt)
        + jnp.einsum("bnc,bmc->bnm", neg, 1 - mask_tgt)) / C

    fpos = (1 - sig) ** FOCAL_GAMMA * pos
    fneg = sig ** FOCAL_GAMMA * neg
    cost += LOSS_WEIGHTS["mask_focal"] * (
        jnp.einsum("bnc,bmc->bnm", fpos, mask_tgt)
        + jnp.einsum("bnc,bmc->bnm", fneg, 1 - mask_tgt)) / C

    rt = reg_tgt * valid_obj[:, :, None]
    mae = jnp.abs(reg_pred[:, :, None, :] - rt[:, None, :, :]).mean(-1)
    cost += LOSS_WEIGHTS["regression"] * mae

    bn = valid_obj.sum(1)
    colm = jnp.arange(N)[None, None, :] < bn[:, None, None]
    return jnp.where(colm, cost, jnp.nan)


# ------------------------------------ main -----------------------------------
if __name__ == "__main__":
    key = jax.random.PRNGKey(0)
    k1, k2, k3, k4, k5, k6 = jax.random.split(key, 6)

    B, N, C, P, R = BATCH, NUM_OBJECTS, MASK_DIM, CLASS_DIM, REG_DIM

    mask_pred = jax.random.normal(k1, (B, N, C), dtype=jnp.float32)
    mask_tgt = (jax.random.uniform(k2, (B, N, C)) > 0.5).astype(jnp.float32)
    class_probs = jax.nn.softmax(jax.random.normal(k3, (B, N, P)), axis=-1)
    reg_pred = jax.random.normal(k4, (B, N, R), dtype=jnp.float32)
    reg_tgt = jax.random.normal(k5, (B, N, R), dtype=jnp.float32)

    # valid objects are placed first, padding (class == NUM_CLASSES) at the end
    n_valid = np.array([6, 4], dtype=np.int32)
    oc = np.full((B, N), NUM_CLASSES, dtype=np.int32)
    rand_cls = np.asarray(jax.random.randint(k6, (B, N), 0, NUM_CLASSES))
    for b in range(B):
        oc[b, : n_valid[b]] = rand_cls[b, : n_valid[b]]
    object_class = jnp.asarray(oc, dtype=jnp.int32)

    preds = {"masks": mask_pred, "class_probs": class_probs, "regression": reg_pred}
    targets = {"masks": mask_tgt, "object_class": object_class, "regression": reg_tgt}

    (batch_idx, match_idx), cost_np, bn_np = hungarian_matcher_forward(preds, targets)

    # verify the Pallas-built cost matrix against a pure-JAX reference
    ref = np.asarray(_ref_cost(class_probs, object_class, mask_pred, mask_tgt,
                               reg_pred, reg_tgt))
    np.testing.assert_allclose(cost_np, ref, rtol=1e-4, atol=1e-4)

    # verify the host LAP solver is optimal (test-only brute force on tiny matrices)
    for b in range(B):
        c = cost_np[b][:, : int(bn_np[b])].astype(np.float64)
        r_i, c_i = _linear_sum_assignment(c)
        assert len(c_i) == c.shape[1]
        assert abs(float(c[r_i, c_i].sum()) - _bruteforce_min_cost(c)) < 1e-5

    assert batch_idx.shape == (B, 1)
    assert match_idx.shape == (B, N)
    assert (bn_np == n_valid).all()
    print("KERNEL_OK")
</pallas_src>

<mosaic_0001>
module attributes {stable_mosaic.version = 11 : i64} {
  func.func @_cost_kernel(%arg0: i32, %arg1: memref<2xi32, #tpu.memory_space<smem>>, %arg2: memref<1x48x128xf32, #tpu.memory_space<vmem>>, %arg3: memref<1x256x128xf32, #tpu.memory_space<vmem>>, %arg4: memref<1x8x128xf32, #tpu.memory_space<vmem>>) attributes {dimension_semantics = [#tpu.dimension_semantics<parallel>], iteration_bounds = array<i64: 2>, scalar_prefetch = 1 : i64, scratch_operands = 0 : i64, tpu.core_type = #tpu.core_type<tc>, window_params = [{transform_indices = @transform_0, window_bounds = array<i64: 1, 48, 128>}, {transform_indices = @transform_1, window_bounds = array<i64: 1, 256, 128>}, {transform_indices = @transform_2, window_bounds = array<i64: 1, 8, 128>}]} {
    %c0 = arith.constant 0 : index
    %c0_0 = arith.constant 0 : index
    %c0_1 = arith.constant 0 : index
    %0 = vector.load %arg2[%c0, %c0_0, %c0_1] : memref<1x48x128xf32, #tpu.memory_space<vmem>>, vector<1x8x128xf32>
    %1 = vector.shape_cast %0 : vector<1x8x128xf32> to vector<8x128xf32>
    %c0_2 = arith.constant 0 : index
    %c8 = arith.constant 8 : index
    %c0_3 = arith.constant 0 : index
    %2 = vector.load %arg2[%c0_2, %c8, %c0_3] : memref<1x48x128xf32, #tpu.memory_space<vmem>>, vector<1x8x128xf32>
    %3 = vector.shape_cast %2 : vector<1x8x128xf32> to vector<8x128xf32>
    %4 = math.absf %1 : vector<8x128xf32>
    %cst = arith.constant 0.000000e+00 : f32
    %5 = vector.broadcast %cst : f32 to vector<8x128xf32>
    %6 = arith.subf %5, %4 : vector<8x128xf32>
    %7 = math.exp %6 : vector<8x128xf32>
    %cst_4 = arith.constant 0.000000e+00 : f32
    %8 = vector.broadcast %cst_4 : f32 to vector<8x128xf32>
    %9 = arith.subf %8, %1 : vector<8x128xf32>
    %cst_5 = arith.constant 0.000000e+00 : f32
    %10 = vector.broadcast %cst_5 : f32 to vector<8x128xf32>
    %11 = arith.maximumf %9, %10 : vector<8x128xf32>
    %12 = math.log1p %7 : vector<8x128xf32>
    %13 = arith.addf %11, %12 : vector<8x128xf32>
    %14 = arith.addf %1, %13 : vector<8x128xf32>
    %15 = arith.negf %1 : vector<8x128xf32>
    %16 = math.exp %15 : vector<8x128xf32>
    %cst_6 = arith.constant 1.000000e+00 : f32
    %17 = vector.broadcast %cst_6 : f32 to vector<8x128xf32>
    %18 = arith.addf %17, %16 : vector<8x128xf32>
    %19 = arith.divf %17, %18 : vector<8x128xf32>
    %cst_7 = arith.constant 1.000000e+00 : f32
    %20 = vector.broadcast %cst_7 : f32 to vector<8x128xf32>
    %21 = arith.subf %20, %19 : vector<8x128xf32>
    %22 = arith.mulf %21, %21 : vector<8x128xf32>
    %23 = arith.mulf %22, %13 : vector<8x128xf32>
    %24 = arith.mulf %19, %19 : vector<8x128xf32>
    %25 = arith.mulf %24, %14 : vector<8x128xf32>
    %26 = arith.subf %23, %25 : vector<8x128xf32>
    %cst_8 = arith.constant 1.000000e+00 : f32
    %27 = vector.broadcast %cst_8 : f32 to vector<8x128xf32>
    %28 = arith.mulf %27, %26 : vector<8x128xf32>
    %cst_9 = arith.constant 1.000000e+00 : f32
    %29 = vector.broadcast %cst_9 : f32 to vector<8x128xf32>
    %30 = arith.mulf %29, %1 : vector<8x128xf32>
    %31 = arith.subf %28, %30 : vector<8x128xf32>
    %cst_10 = arith.constant 7.812500e-03 : f32
    %32 = vector.broadcast %cst_10 : f32 to vector<8x128xf32>
    %33 = arith.mulf %31, %32 : vector<8x128xf32>
    %cst_11 = arith.constant 1.000000e+00 : f32
    %34 = vector.broadcast %cst_11 : f32 to vector<8x128xf32>
    %35 = arith.mulf %34, %14 : vector<8x128xf32>
    %cst_12 = arith.constant 1.000000e+00 : f32
    %36 = vector.broadcast %cst_12 : f32 to vector<8x128xf32>
    %37 = arith.mulf %36, %25 : vector<8x128xf32>
    %38 = arith.addf %35, %37 : vector<8x128xf32>
    %cst_13 = arith.constant 7.812500e-03 : f32
    %39 = vector.broadcast %cst_13 : f32 to vector<8x128xf32>
    %40 = arith.mulf %38, %39 : vector<8x128xf32>
    %cst_14 = arith.constant dense<0.000000e+00> : vector<8xf32>
    %41 = vector.multi_reduction <add>, %40, %cst_14 [1] : vector<8x128xf32> to vector<8xf32>
    %42 = vector.shape_cast %41 : vector<8xf32> to vector<8x1xf32>
    %cst_15 = arith.constant dense<0.000000e+00> : vector<8xf32>
    %43 = vector.multi_reduction <add>, %19, %cst_15 [1] : vector<8x128xf32> to vector<8xf32>
    %44 = vector.shape_cast %43 : vector<8xf32> to vector<8x1xf32>
    %c0_16 = arith.constant 0 : index
    %c0_17 = arith.constant 0 : index
    %c0_18 = arith.constant 0 : index
    %45 = vector.load %arg3[%c0_16, %c0_17, %c0_18] : memref<1x256x128xf32, #tpu.memory_space<vmem>>, vector<1x128x128xf32>
    %46 = vector.shape_cast %45 : vector<1x128x128xf32> to vector<128x128xf32>
    %c0_19 = arith.constant 0 : index
    %c128 = arith.constant 128 : index
    %c0_20 = arith.constant 0 : index
    %47 = vector.load %arg3[%c0_19, %c128, %c0_20] : memref<1x256x128xf32, #tpu.memory_space<vmem>>, vector<1x128x128xf32>
    %48 = vector.shape_cast %47 : vector<1x128x128xf32> to vector<128x128xf32>
    %c0_21 = arith.constant 0 : index
    %c136 = arith.constant 136 : index
    %c0_22 = arith.constant 0 : index
    %49 = vector.load %arg3[%c0_21, %c136, %c0_22] : memref<1x256x128xf32, #tpu.memory_space<vmem>>, vector<1x1x128xf32>
    %50 = vector.shape_cast %49 : vector<1x1x128xf32> to vector<1x128xf32>
    %cst_23 = arith.constant dense<0.000000e+00> : vector<8x128xf32>
    %51 = tpu.matmul %19, %46, %cst_23 {dimension_numbers = #tpu.dot_dimension_numbers<[1], [0], [0], [1], [0, 0, 1, 1], [], []>} : vector<8x128xf32>, vector<128x128xf32>, vector<8x128xf32> -> vector<8x128xf32>
    %cst_24 = arith.constant dense<0.000000e+00> : vector<8x128xf32>
    %52 = tpu.matmul %33, %46, %cst_24 {dimension_numbers = #tpu.dot_dimension_numbers<[1], [0], [0], [1], [0, 0, 1, 1], [], []>} : vector<8x128xf32>, vector<128x128xf32>, vector<8x128xf32> -> vector<8x128xf32>
    %cst_25 = arith.constant dense<0.000000e+00> : vector<8x128xf32>
    %53 = tpu.matmul %3, %48, %cst_25 {dimension_numbers = #tpu.dot_dimension_numbers<[1], [0], [0], [1], [0, 0, 1, 1], [], []>} : vector<8x128xf32>, vector<128x128xf32>, vector<8x128xf32> -> vector<8x128xf32>
    %cst_26 = arith.constant 2.000000e+00 : f32
    %54 = vector.broadcast %cst_26 : f32 to vector<8x128xf32>
    %55 = arith.mulf %54, %51 : vector<8x128xf32>
    %cst_27 = arith.constant 1.000000e+00 : f32
    %56 = vector.broadcast %cst_27 : f32 to vector<8x128xf32>
    %57 = arith.addf %55, %56 : vector<8x128xf32>
    %58 = vector.broadcast %44 : vector<8x1xf32> to vector<8x128xf32>
    %59 = vector.broadcast %50 : vector<1x128xf32> to vector<8x128xf32>
    %60 = arith.addf %58, %59 : vector<8x128xf32>
    %cst_28 = arith.constant 1.000000e+00 : f32
    %61 = vector.broadcast %cst_28 : f32 to vector<8x128xf32>
    %62 = arith.addf %60, %61 : vector<8x128xf32>
    %63 = arith.divf %57, %62 : vector<8x128xf32>
    %cst_29 = arith.constant 1.000000e+00 : f32
    %64 = vector.broadcast %cst_29 : f32 to vector<8x128xf32>
    %65 = arith.subf %64, %63 : vector<8x128xf32>
    %c0_30 = arith.constant 0 : index
    %c16 = arith.constant 16 : index
    %c0_31 = arith.constant 0 : index
    %66 = vector.load %arg2[%c0_30, %c16, %c0_31] : memref<1x48x128xf32, #tpu.memory_space<vmem>>, vector<1x8x128xf32>
    %67 = vector.shape_cast %66 : vector<1x8x128xf32> to vector<8x128xf32>
    %c0_32 = arith.constant 0 : index
    %c144 = arith.constant 144 : index
    %c0_33 = arith.constant 0 : index
    %68 = vector.load %arg3[%c0_32, %c144, %c0_33] : memref<1x256x128xf32, #tpu.memory_space<vmem>>, vector<1x8x128xf32>
    %69 = vector.shape_cast %68 : vector<1x8x128xf32> to vector<8x128xf32>
    %70 = arith.subf %67, %69 : vector<8x128xf32>
    %71 = math.absf %70 : vector<8x128xf32>
    %c0_34 = arith.constant 0 : index
    %c24 = arith.constant 24 : index
    %c0_35 = arith.constant 0 : index
    %72 = vector.load %arg2[%c0_34, %c24, %c0_35] : memref<1x48x128xf32, #tpu.memory_space<vmem>>, vector<1x8x128xf32>
    %73 = vector.shape_cast %72 : vector<1x8x128xf32> to vector<8x128xf32>
    %c0_36 = arith.constant 0 : index
    %c152 = arith.constant 152 : index
    %c0_37 = arith.constant 0 : index
    %74 = vector.load %arg3[%c0_36, %c152, %c0_37] : memref<1x256x128xf32, #tpu.memory_space<vmem>>, vector<1x8x128xf32>
    %75 = vector.shape_cast %74 : vector<1x8x128xf32> to vector<8x128xf32>
    %76 = arith.subf %73, %75 : vector<8x128xf32>
    %77 = math.absf %76 : vector<8x128xf32>
    %78 = arith.addf %71, %77 : vector<8x128xf32>
    %c0_38 = arith.constant 0 : index
    %c32 = arith.constant 32 : index
    %c0_39 = arith.constant 0 : index
    %79 = vector.load %arg2[%c0_38, %c32, %c0_39] : memref<1x48x128xf32, #tpu.memory_space<vmem>>, vector<1x8x128xf32>
    %80 = vector.shape_cast %79 : vector<1x8x128xf32> to vector<8x128xf32>
    %c0_40 = arith.constant 0 : index
    %c160 = arith.constant 160 : index
    %c0_41 = arith.constant 0 : index
    %81 = vector.load %arg3[%c0_40, %c160, %c0_41] : memref<1x256x128xf32, #tpu.memory_space<vmem>>, vector<1x8x128xf32>
    %82 = vector.shape_cast %81 : vector<1x8x128xf32> to vector<8x128xf32>
    %83 = arith.subf %80, %82 : vector<8x128xf32>
    %84 = math.absf %83 : vector<8x128xf32>
    %85 = arith.addf %78, %84 : vector<8x128xf32>
    %c0_42 = arith.constant 0 : index
    %c40 = arith.constant 40 : index
    %c0_43 = arith.constant 0 : index
    %86 = vector.load %arg2[%c0_42, %c40, %c0_43] : memref<1x48x128xf32, #tpu.memory_space<vmem>>, vector<1x8x128xf32>
    %87 = vector.shape_cast %86 : vector<1x8x128xf32> to vector<8x128xf32>
    %c0_44 = arith.constant 0 : index
    %c168 = arith.constant 168 : index
    %c0_45 = arith.constant 0 : index
    %88 = vector.load %arg3[%c0_44, %c168, %c0_45] : memref<1x256x128xf32, #tpu.memory_space<vmem>>, vector<1x8x128xf32>
    %89 = vector.shape_cast %88 : vector<1x8x128xf32> to vector<8x128xf32>
    %90 = arith.subf %87, %89 : vector<8x128xf32>
    %91 = math.absf %90 : vector<8x128xf32>
    %92 = arith.addf %85, %91 : vector<8x128xf32>
    %cst_46 = arith.constant 1.000000e+00 : f32
    %93 = vector.broadcast %cst_46 : f32 to vector<8x128xf32>
    %94 = arith.mulf %93, %65 : vector<8x128xf32>
    %95 = arith.addf %53, %94 : vector<8x128xf32>
    %96 = arith.addf %95, %52 : vector<8x128xf32>
    %97 = vector.broadcast %42 : vector<8x1xf32> to vector<8x128xf32>
    %98 = arith.addf %96, %97 : vector<8x128xf32>
    %cst_47 = arith.constant 2.500000e-01 : f32
    %99 = vector.broadcast %cst_47 : f32 to vector<8x128xf32>
    %100 = arith.mulf %99, %92 : vector<8x128xf32>
    %101 = arith.addf %98, %100 : vector<8x128xf32>
    %102 = tpu.iota {dimensions = array<i32: 1>} : vector<8x128xi32>
    %103 = arith.index_cast %arg0 : i32 to index
    %104 = memref.load %arg1[%103] : memref<2xi32, #tpu.memory_space<smem>>
    %105 = vector.broadcast %104 : i32 to vector<8x128xi32>
    %106 = arith.cmpi slt, %102, %105 : vector<8x128xi32>
    %cst_48 = arith.constant 0x7FC00000 : f32
    %107 = vector.broadcast %cst_48 : f32 to vector<8x128xf32>
    %108 = arith.select %106, %101, %107 : vector<8x128xi1>, vector<8x128xf32>
    %c0_49 = arith.constant 0 : index
    %c0_50 = arith.constant 0 : index
    %c0_51 = arith.constant 0 : index
    %109 = vector.load %arg4[%c0_49, %c0_50, %c0_51] : memref<1x8x128xf32, #tpu.memory_space<vmem>>, vector<1x8x128xf32>
    %110 = vector.shape_cast %109 : vector<1x8x128xf32> to vector<8x128xf32>
    %111 = vector.shape_cast %108 : vector<8x128xf32> to vector<1x8x128xf32>
    tpu.vector_store %arg4[%c0_49, %c0_50, %c0_51], %111 {strides = array<i32>} : memref<1x8x128xf32, #tpu.memory_space<vmem>>, vector<1x8x128xf32>,
    return
  }
  func.func @transform_0(%arg0: i32, %arg1: memref<2xi32, #tpu.memory_space<smem>>) -> (i32, i32, i32) {
    %c0_i32 = arith.constant 0 : i32
    %c0_i32_0 = arith.constant 0 : i32
    %c0_i32_1 = arith.constant 0 : i32
    return %arg0, %c0_i32, %c0_i32_0 : i32, i32, i32
  }
  func.func @transform_1(%arg0: i32, %arg1: memref<2xi32, #tpu.memory_space<smem>>) -> (i32, i32, i32) {
    %c0_i32 = arith.constant 0 : i32
    %c0_i32_0 = arith.constant 0 : i32
    %c0_i32_1 = arith.constant 0 : i32
    return %arg0, %c0_i32, %c0_i32_0 : i32, i32, i32
  }
  func.func @transform_2(%arg0: i32, %arg1: memref<2xi32, #tpu.memory_space<smem>>) -> (i32, i32, i32) {
    %c0_i32 = arith.constant 0 : i32
    %c0_i32_0 = arith.constant 0 : i32
    %c0_i32_1 = arith.constant 0 : i32
    return %arg0, %c0_i32, %c0_i32_0 : i32, i32, i32
  }
}

</mosaic_0001>

<bundles_post_ra>
// kernel: get_batch_cost_pallas.1
= control target key start
LH: loop header
LB: loop body
LE: loop exit
PB: predicated region body
PF: predicated region fallthrough
CT: control target
= control target key end

     0   :  { %s1105_s0 = inlined_call_operand.vmem [shape: s32[2], index: 0, kind: input, shape index: {}]   ;;  %s1106_s1 = inlined_call_operand.vmem [shape: f32[2,48,128], index: 1, kind: input, shape index: {}]   ;;  %s1107_s2 = inlined_call_operand.vmem [shape: f32[2,256,128], index: 2, kind: input, shape index: {}]   ;;  %s1108_s3 = inlined_call_operand.hbm [shape: f32[2,8,128], index: 3, kind: output, shape index: {}]  }
   0x1   :  { %s8_s14 = sshll.u32 %s1105_s0, 4  ;;  %s9_s14 = int_to_ptr.vmem [resolvable:$true] %s8_s14 }
   0x2   :  { %s801_s15 = scalar_lea.vmem %s9_s14, 16  ;;  %p806_p1 = scmp.lt.s32.totalorder %s9_s14, %s9_s14 }
   0x3   :  { %p802_p0 = scmp.ne.s32.totalorder %s9_s14, %s801_s15  ;;  %p807_p2 = scmp.lt.s32.totalorder %s801_s15, %s801_s15 }
   0x5   :  { %p808_p3 = por %p807_p2, %p806_p1 }
   0x7   :  { %p809_p4 = pnand %p808_p3, %p802_p0 }
   0x9   :  { %812 = shalt.err (!%p809_p4)  }
   0xa   :  { %s877_s16 = smov [#allocation3]  }
   0xb   :  { %11 = dma.vmem_to_smem %s9_s14, 16, %s877_s16, [#allocation2] }
   0xc   :  { %855 = dma.done.wait [#allocation2], 16 }
   0xd   :  { %856 = vsyncadd [#allocation2], 4294967280 }
   0xe   :  { %13 = sfence }
   0xf   :  { %14 = vsyncpa [#allocation5], 0 }
  0x10   :  { %16 = vsyncpa [#allocation5 + $0x1], 0  ;;  %s904_s17 = smov 0   ;;  %s906_s18 = smov 0  }
  0x11   :  { %s908_s0 = smov 0   ;;  %s910_s19 = smov 0  }
  0x12 LB: > { %s925_s20 = sadd.s32 4294967295, %s875_s19   ;;  %s577_s21 = sadd.s32 4294967294, %s875_s19   ;;  %s875_s19 = sphi %s910_s19, %s1114_s19   ;;  %s871_s0 = sphi %s908_s0, %s1113_s0   ;;  %s867_s18 = sphi %s906_s18, %s1112_s18   ;;  %s863_s17 = sphi %s904_s17, %s1111_s17  }
  0x13   : > { %s929_s22 = sadd.s32 1, %s875_s19   ;;  %s81_s23 = sadd.s32 1, %s871_s0 }
  0x14   : > { %s78_s24 = ssub.s32 %s875_s19, %s929_s22  ;;  %p91_p5 = scmp.ne.s32.totalorder %s871_s0, %s867_s18 }
  0x15   : > { %p79_p6 = scmp.eq.s32.totalorder %s78_s24, 0  ;;  %p92_p7 = scmp.eq.s32.totalorder %s925_s20, 1 }
  0x16   : > { %p97_p8 = scmp.ne.s32.totalorder %s867_s18, %s863_s17  ;;  %p98_p9 = scmp.eq.s32.totalorder %s577_s21, 1 }
  0x17   : > { %s940_s25 = scalar_select %p79_p6, %s871_s0, %s81_s23  }
  0x18   : > { %p942_p10 = por %p92_p7, %p91_p5  ;;  %p946_p11 = por %p98_p9, %p97_p8 }
  0x19   : > { %p580_p12 = scmp.ge.s32.totalorder %s875_s19, 1  ;;  %p132_p13 = scmp.lt.s32.totalorder %s875_s19, 3 }
  0x1b   : > { %p133_p0 = pnand %p580_p12, %p132_p13 }
  0x1c   : > { %p159_p1 = scmp.lt.s32.totalorder (!%p133_p0), %s925_s20, 1  ;;  %s487_s10 = sld [smem:[#allocation3 + %s925_s20]] (!%p133_p0) }
  0x1d   : > { %136 = sbr.rel (%p133_p0) target bundleno = 320 (0x140), region = 28  ;;  %s156_s11 = sand.u32 (!%p133_p0), 1, %s867_s18  }
  0x1e   : > { %s581_s12 = sshll.u32 (!%p133_p0), %s156_s11, 3  ;;  %s588_s13 = sshll.u32 (!%p133_p0), %s925_s20, 7 }
  0x1f   : > { %s158_s14 = scalar_lea.vmem (!%p133_p0), [#allocation4], %s581_s12  ;;  %s1070_s23 = scalar_lea.hbm (!%p133_p0), %s1108_s3, %s588_s13 }
  0x20   : > { %s506_s15 = sshll.u32 (!%p133_p0), %s158_s14, 4  ;;  %s493_s24 = scalar_lea.sflag (!%p133_p0), [#allocation5], %s156_s11  ;;  %s507_s15 = int_to_ptr.vmem [resolvable:$true] %s506_s15 }
  0x22   : > { %v878_v0 = vmov 0.0   ;;  %vm879_vm0 = vmmov 0   ;;  %s160_s28 = scalar_select %p159_p1, %s925_s20, 1 }
  0x23   : > { %643 = vmatprep.subr.mxu0 %v878_v0  ;;  %675 = vmatprep.mubr.msk.f32.mxu0 %vm879_vm0, %v878_v0 }
  0x24   : > { %678 = vmatprep.subr.mxu1 %v878_v0  ;;  %710 = vmatprep.mubr.msk.f32.mxu1 %vm879_vm0, %v878_v0  ;;  %s591_s29 = sshll.u32 %s160_s28, 8  ;;  %s748_s30 = smul.u32 48, %s160_s28 }
  0x25   : > { %s963_s6 = scalar_lea.vmem %s1107_s2, %s591_s29  ;;  %s813_s28 = scalar_lea.vmem %s507_s15, 128 }
  0x26   : > { %v223_v1 = vld [vmem:[%s963_s6 + $0x78] sm:$0xff]  ;;  %v222_v2 = vld [vmem:[%s963_s6 + $0x70] sm:$0xff]  ;;  %v221_v3 = vld [vmem:[%s963_s6 + $0x68] sm:$0xff]  ;;  %s972_s9 = scalar_lea.vmem %s1106_s1, %s748_s30  ;;  %p814_p2 = scmp.ne.s32.totalorder %s507_s15, %s813_s28 }
  0x27   : > { %644 = vmatpush3.msra.mxu0 %v223_v1  ;;  %679 = vmatpush3.msra.mxu1 %v223_v1  ;;  %v220_v4 = vld [vmem:[%s963_s6 + $0x60] sm:$0xff]  ;;  %v219_v6 = vld [vmem:[%s963_s6 + $0x58] sm:$0xff]  ;;  %v218_v9 = vld [vmem:[%s963_s6 + $0x50] sm:$0xff]  ;;  %s880_s29 = smov [#allocation4]  }
  0x28   : > { %645 = vmatprep.subr.mxu0 %v878_v0  ;;  %680 = vmatprep.subr.mxu1 %v878_v0  ;;  %v979_v5 = vld [vmem:[%s972_s9] sm:$0xff]  ;;  %v217_v11 = vld [vmem:[%s963_s6 + $0x48] sm:$0xff]  ;;  %v215_v14 = vld [vmem:[%s963_s6 + $0x38] sm:$0xff]  ;;  %p815_p3 = pnand %p814_p2, %p942_p10  ;;  %s817_s20 = sshll.u32 %s880_s29, 4  ;;  %s818_s20 = int_to_ptr.vmem [resolvable:$false] %s817_s20 }
  0x29   : > { %646 = vmatpush3.msra.mxu0 %v222_v2  ;;  %681 = vmatpush3.msra.mxu1 %v222_v2  ;;  %v585_v7 = vmul.f32 -1.442695, %v979_v5  ;;  %v171_v8 = vand.u32 2147483647, %v979_v5  ;;  %v216_v13 = vld [vmem:[%s963_s6 + $0x40] sm:$0xff]  ;;  %v214_v15 = vld [vmem:[%s963_s6 + $0x30] sm:$0xff]  ;;  %p820_p5 = scmp.lt.s32.totalorder %s507_s15, %s818_s20 }
  0x2a   : > { %647 = vmatprep.subr.mxu0 %v878_v0  ;;  %682 = vmatprep.subr.mxu1 %v878_v0  ;;  %v213_v16 = vld [vmem:[%s963_s6 + $0x28] sm:$0xff]  ;;  %v212_v17 = vld [vmem:[%s963_s6 + $0x20] sm:$0xff]  ;;  %v211_v19 = vld [vmem:[%s963_s6 + $0x18] sm:$0xff]  ;;  %v175_v31 = vsub.f32 0.0, %v979_v5  ;;  %p816_p4 = pneg %p815_p3  ;;  %s819_s30 = scalar_lea.vmem %s818_s20, 256 }
  0x2b   : > { %648 = vmatpush3.msra.mxu0 %v221_v3  ;;  %683 = vmatpush3.msra.mxu1 %v221_v3  ;;  %791 = vpow2.f32 %v585_v7  ;;  %v172_v10 = vsub.f32 0.0, %v171_v8  ;;  %v210_v21 = vld [vmem:[%s963_s6 + $0x10] sm:$0xff]  ;;  %v209_v23 = vld [vmem:[%s963_s6 + $0x8] sm:$0xff]  ;;  %v208_v25 = vld [vmem:[%s963_s6] sm:$0xff]  ;;  %p821_p6 = scmp.lt.s32.totalorder %s819_s30, %s813_s28 }
  0x2c   : > { %649 = vmatprep.subr.mxu0 %v878_v0  ;;  %684 = vmatprep.subr.mxu1 %v878_v0  ;;  %v239_v27 = vld [vmem:[%s963_s6 + $0xf8] sm:$0xff]  ;;  %v238_v30 = vld [vmem:[%s963_s6 + $0xf0] sm:$0xff]  ;;  %v237_v33 = vld [vmem:[%s963_s6 + $0xe8] sm:$0xff]  ;;  %v176_v38 = vmax.f32 %v175_v31, 0.0 }
  0x2d   : > { %650 = vmatpush3.msra.mxu0 %v220_v4  ;;  %685 = vmatpush3.msra.mxu1 %v220_v4  ;;  %v173_v12 = vmul.f32 1.442695, %v172_v10  ;;  %v236_v37 = vld [vmem:[%s963_s6 + $0xe0] sm:$0xff]  ;;  %v235_v40 = vld [vmem:[%s963_s6 + $0xd8] sm:$0xff]  ;;  %v234_v43 = vld [vmem:[%s963_s6 + $0xd0] sm:$0xff]  ;;  %p822_p7 = por %p821_p6, %p820_p5 }
  0x2e   : > { %651 = vmatprep.subr.mxu0 %v878_v0  ;;  %686 = vmatprep.subr.mxu1 %v878_v0  ;;  %v233_v46 = vld [vmem:[%s963_s6 + $0xc8] sm:$0xff]  ;;  %v232_v49 = vld [vmem:[%s963_s6 + $0xc0] sm:$0xff]  ;;  %v231_v51 = vld [vmem:[%s963_s6 + $0xb8] sm:$0xff] }
  0x2f   : > { %652 = vmatpush3.msra.mxu0 %v219_v6  ;;  %687 = vmatpush3.msra.mxu1 %v219_v6  ;;  %793 = vpow2.f32 %v173_v12  ;;  %v230_v54 = vld [vmem:[%s963_s6 + $0xb0] sm:$0xff]  ;;  %v229_v57 = vld [vmem:[%s963_s6 + $0xa8] sm:$0xff]  ;;  %v228_v59 = vld [vmem:[%s963_s6 + $0xa0] sm:$0xff]  ;;  %p823_p8 = pnand %p822_p7, %p816_p4 }
  0x30   : > { %653 = vmatprep.subr.mxu0 %v878_v0  ;;  %688 = vmatprep.subr.mxu1 %v878_v0  ;;  %v227_v60 = vld [vmem:[%s963_s6 + $0x98] sm:$0xff]  ;;  %v226_v61 = vld [vmem:[%s963_s6 + $0x90] sm:$0xff]  ;;  %v225_v62 = vld [vmem:[%s963_s6 + $0x88] sm:$0xff] }
  0x31   : > { %654 = vmatpush3.msra.mxu0 %v218_v9  ;;  %689 = vmatpush3.msra.mxu1 %v218_v9  ;;  %v224_v63 = vld [vmem:[%s963_s6 + $0x80] sm:$0xff]  ;;  %v170_v1 = vld [vmem:[%s972_s9 + $0x8] sm:$0xff]  ;;  %v392_v8 = vld [vmem:[%s972_s9 + $0x10] sm:$0xff] }
  0x32   : > { %655 = vmatprep.subr.mxu0 %v878_v0  ;;  %690 = vmatprep.subr.mxu1 %v878_v0  ;;  %v586_v2 = vld [vmem:[%s963_s6 + $0x88] ss:$0 sm:$0xff]  ;;  %v396_v9 = vld [vmem:[%s972_s9 + $0x18] sm:$0xff]  ;;  %v394_v10 = vsub.f32 %v392_v8, %v226_v61  ;;  %v401_v12 = vld [vmem:[%s972_s9 + $0x20] sm:$0xff] }
  0x33   : > { %656 = vmatpush3.msra.mxu0 %v217_v11  ;;  %691 = vmatpush3.msra.mxu1 %v217_v11  ;;  %v398_v11 = vsub.f32 %v396_v9, %v227_v60 }
  0x34   : > { %657 = vmatprep.subr.mxu0 %v878_v0  ;;  %692 = vmatprep.subr.mxu1 %v878_v0 }
  0x35   : > { %658 = vmatpush3.msra.mxu0 %v216_v13  ;;  %693 = vmatpush3.msra.mxu1 %v216_v13 }
  0x36   : > { %659 = vmatprep.subr.mxu0 %v878_v0  ;;  %694 = vmatprep.subr.mxu1 %v878_v0 }
  0x37   : > { %660 = vmatpush3.msra.mxu0 %v215_v14  ;;  %695 = vmatpush3.msra.mxu1 %v215_v14  ;;  %v395_v14 = vand.u32 2147483647, %v394_v10 }
  0x38   : > { %661 = vmatprep.subr.mxu0 %v878_v0  ;;  %696 = vmatprep.subr.mxu1 %v878_v0  ;;  %v792_v18 = vpop.eup %791 }
  0x39   : > { %662 = vmatpush3.msra.mxu0 %v214_v15  ;;  %697 = vmatpush3.msra.mxu1 %v214_v15  ;;  %v191_v20 = vadd.f32 1.0, %v792_v18  ;;  %v403_v15 = vsub.f32 %v401_v12, %v228_v59 }
  0x3a   : > { %663 = vmatprep.subr.mxu0 %v878_v0  ;;  %698 = vmatprep.subr.mxu1 %v878_v0 }
  0x3b   : > { %664 = vmatpush3.msra.mxu0 %v213_v16  ;;  %699 = vmatpush3.msra.mxu1 %v213_v16  ;;  %795 = vrcp.f32 %v191_v20 }
  0x3c   : > { %665 = vmatprep.subr.mxu0 %v878_v0  ;;  %700 = vmatprep.subr.mxu1 %v878_v0  ;;  %v794_v22 = vpop.eup %793 }
  0x3d   : > { %666 = vmatpush3.msra.mxu0 %v212_v17  ;;  %701 = vmatpush3.msra.mxu1 %v212_v17  ;;  %v177_v24 = vadd.f32 1.0, %v794_v22  ;;  %v180_v26 = vmul.f32 -0.5, %v794_v22  ;;  %v183_v32 = vand.u32 2147483647, %v794_v22  ;;  %v406_v17 = vld [vmem:[%s972_s9 + $0x28] sm:$0xff] }
  0x3e   : > { %667 = vmatprep.subr.mxu0 %v878_v0  ;;  %702 = vmatprep.subr.mxu1 %v878_v0 }
  0x3f   : > { %668 = vmatpush3.msra.mxu0 %v211_v19  ;;  %703 = vmatpush3.msra.mxu1 %v211_v19  ;;  %797 = vlog2.f32 %v177_v24  ;;  %v181_v29 = vadd.f32 1.0, %v180_v26  ;;  %vm184_vm1 = vcmp.lt.f32.partialorder %v183_v32, 0.0004427343 }
  0x40   : > { %669 = vmatprep.subr.mxu0 %v878_v0  ;;  %704 = vmatprep.subr.mxu1 %v878_v0 }
  0x41   : > { %670 = vmatpush3.msra.mxu0 %v210_v21  ;;  %705 = vmatpush3.msra.mxu1 %v210_v21  ;;  %v182_v35 = vmul.f32 %v794_v22, %v181_v29  ;;  %v404_v21 = vand.u32 2147483647, %v403_v15  ;;  %v408_v22 = vsub.f32 %v406_v17, %v229_v57 }
  0x42   : > { %671 = vmatprep.subr.mxu0 %v878_v0  ;;  %706 = vmatprep.subr.mxu1 %v878_v0 }
  0x43   : > { %672 = vmatpush3.msra.mxu0 %v209_v23  ;;  %707 = vmatpush3.msra.mxu1 %v209_v23  ;;  %v409_v26 = vand.u32 2147483647, %v408_v22 }
  0x44   : > { %673 = vmatprep.subr.mxu0 %v878_v0  ;;  %708 = vmatprep.subr.mxu1 %v878_v0 }
  0x45   : > { %674 = vmatpush3.msra.mxu0 %v208_v25  ;;  %709 = vmatpush3.msra.mxu1 %v208_v25 }
  0x46   : > { %713 = vmatprep.subr.mxu0 %v878_v0 }
  0x48   : > { %v796_v28 = vpop.eup %795 }
  0x49   : > { %676 = vmatmul.mubr.f32.vlgmr.msra.gmra.mxu0 %v796_v28  ;;  %206 = vadd.xlane.f32.xlu0 %v796_v28  ;;  %v194_v34 = vsub.f32 1.0, %v796_v28  ;;  %v197_v45 = vmul.f32 %v796_v28, %v796_v28 }
  0x4a   : > { %714 = vmatpush3.msra.mxu0 %v239_v27  ;;  %745 = vmatprep.mubr.msk.f32.mxu0 %vm879_vm0, %v878_v0  ;;  %v485_v27 = vlaneseq }
  0x4b   : > { %715 = vmatprep.subr.mxu0 %v878_v0  ;;  %v195_v41 = vmul.f32 %v194_v34, %v194_v34 }
  0x4c   : > { %716 = vmatpush3.msra.mxu0 %v238_v30  ;;  %v798_v36 = vpop.eup %797  ;;  %v486_v34 = vand.u32 127, %v485_v27 }
  0x4d   : > { %717 = vmatprep.subr.mxu0 %v878_v0  ;;  %v179_v39 = vmul.f32 0.6931472, %v798_v36 }
  0x4e   : > { %718 = vmatpush3.msra.mxu0 %v237_v33 }
  0x4f   : > { %719 = vmatprep.subr.mxu0 %v878_v0  ;;  %v185_v42 = vsel %vm184_vm1, %v182_v35, %v179_v39 }
  0x50   : > { %720 = vmatpush3.msra.mxu0 %v236_v37  ;;  %v186_v44 = vadd.f32 %v185_v42, %v176_v38  ;;  %v488_v37 = vstv %s487_s10 }
  0x51   : > { %721 = vmatprep.subr.mxu0 %v878_v0  ;;  %vm489_vm2 = vcmp.lt.s32.totalorder %v486_v34, %v488_v37 }
  0x52   : > { %722 = vmatpush3.msra.mxu0 %v235_v40  ;;  %v187_v47 = vadd.f32 %v186_v44, %v979_v5  ;;  %v196_v48 = vmul.f32 %v195_v41, %v186_v44 }
  0x53   : > { %723 = vmatprep.subr.mxu0 %v878_v0 }
  0x54   : > { %724 = vmatpush3.msra.mxu0 %v234_v43  ;;  %v198_v50 = vmul.f32 %v197_v45, %v187_v47 }
  0x55   : > { %725 = vmatprep.subr.mxu0 %v878_v0 }
  0x56   : > { %726 = vmatpush3.msra.mxu0 %v233_v46  ;;  %v199_v52 = vsub.f32 %v196_v48, %v198_v50  ;;  %v202_v53 = vadd.f32 %v198_v50, %v187_v47 }
  0x57   : > { %727 = vmatprep.subr.mxu0 %v878_v0 }
  0x58   : > { %728 = vmatpush3.msra.mxu0 %v232_v49  ;;  %v200_v55 = vsub.f32 %v199_v52, %v979_v5  ;;  %v203_v56 = vmul.f32 0.0078125, %v202_v53 }
  0x59   : > { %729 = vmatprep.subr.mxu0 %v878_v0 }
  0x5a   : > { %730 = vmatpush3.msra.mxu0 %v231_v51  ;;  %v201_v58 = vmul.f32 0.0078125, %v200_v55  ;;  %204 = vadd.xlane.f32.xlu0 %v203_v56 }
  0x5b   : > { %731 = vmatprep.subr.mxu0 %v878_v0 }
  0x5c   : > { %732 = vmatpush3.msra.mxu0 %v230_v54  ;;  %711 = vmatmul.mubr.f32.vlgmr.msra.gmra.mxu1 %v201_v58 }
  0x5d   : > { %733 = vmatprep.subr.mxu0 %v878_v0 }
  0x5e   : > { %734 = vmatpush3.msra.mxu0 %v229_v57 }
  0x5f   : > { %735 = vmatprep.subr.mxu0 %v878_v0 }
  0x60   : > { %736 = vmatpush3.msra.mxu0 %v228_v59 }
  0x61   : > { %737 = vmatprep.subr.mxu0 %v878_v0 }
  0x62   : > { %738 = vmatpush3.msra.mxu0 %v227_v60 }
  0x63   : > { %739 = vmatprep.subr.mxu0 %v878_v0 }
  0x64   : > { %740 = vmatpush3.msra.mxu0 %v226_v61 }
  0x65   : > { %741 = vmatprep.subr.mxu0 %v878_v0 }
  0x66   : > { %742 = vmatpush3.msra.mxu0 %v225_v62 }
  0x67   : > { %743 = vmatprep.subr.mxu0 %v878_v0  ;;  %v399_v0 = vand.u32 2147483647, %v398_v11 }
  0x68   : > { %744 = vmatpush3.msra.mxu0 %v224_v63 }
  0x69   : > { %746 = vmatmul.mubr.f32.vlgmr.msra.gmra.mxu0 %v170_v1  ;;  %v400_v20 = vadd.f32 %v399_v0, %v395_v14 }
  0x6b   : > { %v405_v25 = vadd.f32 %v404_v21, %v400_v20 }
  0x6d   : > { %v410_v29 = vadd.f32 %v409_v26, %v405_v25 }
  0x6f   : > { %v483_v35 = vmul.f32 0.25, %v410_v29 }
  0xd2   : > { %v207_v3 = vpop.xlane.xlu0 %206 }
  0xd3   : > { %v387_v6 = vadd.f32 %v586_v2, %v207_v3 }
  0xd5   : > { %v388_v7 = vadd.f32 1.0, %v387_v6 }
  0xd7   : > { %799 = vrcp.f32 %v388_v7 }
  0xe3   : > { %v205_v33 = vpop.xlane.xlu0 %204 }
  0xe4   : > { %v800_v23 = vpop.eup %799 }
 0x109   : > { %v307_v4 = vpop.f32.mrf.mxu0 }
 0x10a   : > { %v381_v13 = vmul.f32 2.0, %v307_v4 }
 0x10b   : > { %v677_v5 = vpop.f32.mrf.mxu0 }
 0x10c   : > { %v382_v19 = vadd.f32 1.0, %v381_v13 }
 0x10e   : > { %v390_v24 = vmul.f32 %v800_v23, %v382_v19 }
 0x110   : > { %v391_v28 = vsub.f32 1.0, %v390_v24 }
 0x11c   : > { %v377_v16 = vpop.f32.mrf.mxu1 }
 0x11e   : > { %v712_v18 = vpop.f32.mrf.mxu1 }
 0x129   : > { %v477_v30 = vpop.f32.mrf.mxu0 }
 0x12a   : > { %v478_v31 = vadd.f32 %v477_v30, %v391_v28 }
 0x12b   : > { %v747_v32 = vpop.f32.mrf.mxu0 }
 0x12c   : > { %v481_v36 = vadd.f32 %v478_v31, %v377_v16 }
 0x12e   : > { %v482_v38 = vadd.f32 %v481_v36, %v205_v33 }
 0x130   : > { %v484_v39 = vadd.f32 %v483_v35, %v482_v38 }
 0x132   : > { %v490_v40 = vsel %vm489_vm2, %v484_v39, nan }
 0x133   : > { %491 = vst [vmem:[%s158_s14] sm:$0xff] %v490_v40 }
 0x134   : > { %826 = shalt.err (!%p823_p8)
}
 0x135   : > { %s827_s4 = scalar_lea.hbm %s1070_s23, 128  ;;  %s831_s7 = scalar_lea.hbm %s1108_s3, 256 }
 0x136   : > { %p828_p9 = scmp.ne.s32.totalorder %s1070_s23, %s827_s4  ;;  %p832_p0 = scmp.lt.s32.totalorder %s1070_s23, %s1108_s3 }
 0x137   : > { %p833_p1 = scmp.lt.s32.totalorder %s831_s7, %s827_s4 }
 0x138   : > { %p829_p12 = pnand %p828_p9, %p942_p10 }
 0x139   : > { %p834_p2 = por %p833_p1, %p832_p0 }
 0x13a   : > { %p830_p13 = pneg %p829_p12 }
 0x13c   : > { %p835_p3 = pnand %p834_p2, %p830_p13 }
 0x13e   : > { %838 = shalt.err (!%p835_p3)
}
 0x13f   : > { %749 = dma.vmem_to_hbm [thread:$0]  (%p942_p10), %s507_s15, 128, %s1070_s23, %s493_s24  }
 0x140 PF: > { %p755_p4 = scmp.ge.s32.totalorder %s875_s19, 2  ;;  %s518_s10 = sand.u32 1, %s863_s17  }
 0x141   : > { %s519_s11 = scalar_lea.sflag [#allocation5], %s518_s10 }
 0x142   : > { %p752_p5 = pnand %p755_p4, %p946_p11 }
 0x144   : > { %p753_p6 = pneg %p752_p5 }
 0x146   : > { %858 = dma.done.wait (%p753_p6), %s519_s11, 128  }
 0x147   : > { %860 = vsyncadd (%p753_p6), %s519_s11, 4294967168  ;;  %p19_p7 = scmp.ge.s32.totalorder %s929_s22, 4   ;;  %s1111_s17 = smov %s867_s18 }
 0x148   : > { %s1112_s18 = smov %s871_s0  ;;  %s1113_s0 = smov %s940_s25 }
 0x149   : > { %s1114_s19 = smov %s929_s22  ;;  %21 = sbr.rel (!%p19_p7) target bundleno = 18 (0x12), region = 66 }
 0x14e   :  { %524 = vsyncpa [#allocation5], 1 }
 0x14f   :  { %526 = vsyncpa [#allocation5 + $0x1], 1 }

</bundles_post_ra>
